<compile_context>
chip_gen: v7x
topology: tpu7x:2x2x1
jax: 0.10.0
libtpu: 0.0.40
codegen_flags: <defaults>
</compile_context>

<pallas_src>
import functools

import jax
import jax.numpy as jnp
from jax.experimental import pallas as pl
from jax.experimental.pallas import tpu as pltpu


# Explicit scoped-VMEM limit. 32 MiB is the default scoped limit on v6e/v7x and
# comfortably below v7x's 64 MiB physical VMEM per TensorCore; it raises v5e's
# 16 MiB default. The tb selection below budgets against ~75% of this.
_VMEM_LIMIT_BYTES = 32 * 1024 * 1024


def _select_tb(B, S, H, L):
    """Pick how many batch elements to fold per grid step.

    Largest divisor of B that (a) keeps >= min(8, B) grid steps so the
    BlockSpec pipeline reaches a steady state (and megacore has work to shard),
    and (b) fits a conservative per-step VMEM estimate into ~75% of the scoped
    limit (v7x-safe sizing).
    """
    budget = int(0.75 * _VMEM_LIMIT_BYTES)

    def vmem_estimate(tb):
        text_blk = 2 * tb * S * H * 4                    # double-buffered text block (f32 worst case)
        out_blk = 2 * tb * L * H * 4                     # double-buffered output block
        invariants = (2 * H * H + L * H) * 2 + (L * H + 2 * H) * 4   # bf16 Wk/Wv/q + f32 tok/bk/bv
        live = (tb * S * H * (4 + 4 + 2 + 2)             # k/v f32 + bf16 copies
                + tb * L * S * 4 * 2                     # scores + probs (f32)
                + tb * L * H * 4)                        # attention output (f32)
        return text_blk + out_blk + invariants + live

    divisors = [d for d in range(1, B + 1) if B % d == 0]
    min_steps = min(8, B)
    ok = [d for d in divisors if (B // d) >= min_steps and vmem_estimate(d) <= budget]
    if ok:
        return max(ok)
    ok = [d for d in divisors if vmem_estimate(d) <= budget]
    return max(ok) if ok else 1


def _reorder_kernel(tok_ref, q_ref, text_ref, wk_ref, wv_ref, bk_ref, bv_ref,
                    o_ref, *, ratio):
    # tok_ref : (L, H)    f32   shared learned tokens (residual + row-0 passthrough)
    # q_ref   : (L, H)    bf16  precomputed tokeners @ Wq + bq (batch-invariant)
    # text_ref: (tb*S, H) f32/bf16  flat text slab for this grid step
    # wk_ref  : (H, H)    bf16 ; wv_ref: (H, H) bf16
    # bk_ref  : (1, H)    f32  ; bv_ref: (1, H) f32
    # o_ref   : (tb, L, H) f32
    length, hid = tok_ref.shape
    tb = o_ref.shape[0]
    seq = text_ref.shape[0] // tb

    # bf16 operands for the MXU (no-op cast when the wrapper already passed bf16).
    text = text_ref[...].astype(jnp.bfloat16)                       # (tb*S, H)

    # K / V projections on the flat slab: two MXU matmuls sharing the same LHS,
    # f32 accumulation, f32 bias add.  No fused (tb*S, 2H) intermediate and no
    # value slices of it.
    k_flat = jnp.dot(text, wk_ref[...],
                     preferred_element_type=jnp.float32) + bk_ref[...]
    v_flat = jnp.dot(text, wv_ref[...],
                     preferred_element_type=jnp.float32) + bv_ref[...]

    # Back to (tb, S, H) for the batched attention matmuls (layout-free split of
    # the sublane dim when S % 8 == 0 for the f32 result).
    k = k_flat.reshape(tb, seq, hid).astype(jnp.bfloat16)
    v = v_flat.reshape(tb, seq, hid).astype(jnp.bfloat16)

    # Scores for all L query rows (row 0 is masked out below, so the extra row
    # is free on the MXU and keeps the tile sublane-aligned). q is batch
    # invariant; the broadcast is tiny (tb*L*H bf16).
    qb = jnp.broadcast_to(q_ref[...], (tb, length, hid))            # bf16
    s = jnp.einsum('blh,bsh->bls', qb, k,
                   preferred_element_type=jnp.float32) * ratio      # (tb, L, S) f32

    # Numerically-stable softmax in f32 with exact division (EUP is not the
    # bottleneck; keeps tight accuracy).
    s = s - jnp.max(s, axis=-1, keepdims=True)
    p = jnp.exp(s)
    p = p / jnp.sum(p, axis=-1, keepdims=True)

    pv = jnp.einsum('bls,bsh->blh', p.astype(jnp.bfloat16), v,
                    preferred_element_type=jnp.float32)             # (tb, L, H) f32

    # Aligned masked residual write: row 0 = tokeners[0] passthrough, rows
    # 1..L-1 = order + attention output (same semantics as the reference concat,
    # with no sublane-misaligned slices).
    tok = tok_ref[...]                                              # (L, H) f32
    row = jax.lax.broadcasted_iota(jnp.int32, (length, hid), 0)
    out = tok[None, :, :] + jnp.where(row[None] >= 1, pv, 0.0)
    o_ref[...] = out.astype(o_ref.dtype)


def reorder_forward(text_embedding, tokeners, wq, bq, wk, bk, wv, bv, *, tb=None):
    """text_embedding: (B, S, H); tokeners: (L, H); weights: (H, H); biases: (1, H)."""
    B, S, H = text_embedding.shape
    L, _ = tokeners.shape
    ratio = float(H) ** -0.5

    if tb is None:
        tb = _select_tb(B, S, H, L)
    assert B % tb == 0, (B, tb)

    # Batch-invariant Q projection hoisted out of the grid (f32 math once in the
    # wrapper, bf16 operand for the in-kernel MXU matmuls).
    q_all = (tokeners @ wq + bq).astype(jnp.bfloat16)               # (L, H)

    # bf16 weights for the MXU; biases stay f32 (added after f32 accumulation).
    wk_b = wk.astype(jnp.bfloat16)
    wv_b = wv.astype(jnp.bfloat16)

    # Flatten (B, S, H) -> (B*S, H) in the wrapper so the kernel sees a
    # lane-dense flat slab and needs no in-kernel input reshape.
    text_flat = text_embedding.reshape(B * S, H)
    # Halve text DMA bytes whenever the (tb*S, H) bf16 block is tile-legal
    # (16-row sublane packing, or the block covers the full array).
    if (tb * S) % 16 == 0 or tb == B:
        text_flat = text_flat.astype(jnp.bfloat16)

    kernel = functools.partial(_reorder_kernel, ratio=ratio)

    return pl.pallas_call(
        kernel,
        out_shape=jax.ShapeDtypeStruct((B, L, H), jnp.float32),
        grid_spec=pltpu.PrefetchScalarGridSpec(
            num_scalar_prefetch=0,
            grid=(B // tb,),
            in_specs=[
                # Grid-invariant operands: single-buffered (no double buffering
                # of constant weights/tokens).
                pl.BlockSpec((L, H), lambda b: (0, 0),
                             pipeline_mode=pl.Buffered(1)),          # tokeners (f32)
                pl.BlockSpec((L, H), lambda b: (0, 0),
                             pipeline_mode=pl.Buffered(1)),          # hoisted Q (bf16)
                pl.BlockSpec((tb * S, H), lambda b: (b, 0)),          # flat text block
                pl.BlockSpec((H, H), lambda b: (0, 0),
                             pipeline_mode=pl.Buffered(1)),          # Wk (bf16)
                pl.BlockSpec((H, H), lambda b: (0, 0),
                             pipeline_mode=pl.Buffered(1)),          # Wv (bf16)
                pl.BlockSpec((1, H), lambda b: (0, 0),
                             pipeline_mode=pl.Buffered(1)),          # bk (f32)
                pl.BlockSpec((1, H), lambda b: (0, 0),
                             pipeline_mode=pl.Buffered(1)),          # bv (f32)
            ],
            out_specs=pl.BlockSpec((tb, L, H), lambda b: (b, 0, 0)),
        ),
        compiler_params=pltpu.CompilerParams(
            dimension_semantics=("parallel",),
            vmem_limit_bytes=_VMEM_LIMIT_BYTES),
    )(tokeners, q_all, text_flat, wk_b, wv_b, bk, bv)


def reorder_reference(text_embedding, tokeners, wq, bq, wk, bk, wv, bv):
    """Pure-JAX f32 reference mirroring the PyTorch forward."""
    B, S, H = text_embedding.shape
    ratio = float(H) ** -0.5
    tok = jnp.broadcast_to(tokeners[None], (B,) + tokeners.shape)   # (B, L, H)
    order = tok[:, 1:, :]
    q = order @ wq + bq
    k = text_embedding @ wk + bk
    v = text_embedding @ wv + bv
    s = jnp.einsum("bqh,bkh->bqk", q, k) * ratio
    p = jax.nn.softmax(s, axis=-1)
    out = order + jnp.einsum("bqk,bkh->bqh", p, v)
    return jnp.concatenate([tok[:, 0:1, :], out], axis=1)


if __name__ == "__main__":
    # Small shapes consistent with the module: batch=2, seq=8, length=8, hidden=32.
    B, S, L, H = 2, 8, 8, 32

    key = jax.random.PRNGKey(0)
    ks = jax.random.split(key, 8)

    text_embedding = jax.random.normal(ks[0], (B, S, H), dtype=jnp.float32)

    # Deterministic synthetic parameters (shapes match nn.Parameter / nn.Linear).
    tokeners = 0.02 * jax.random.normal(ks[1], (L, H), dtype=jnp.float32)
    wq = jax.random.normal(ks[2], (H, H), dtype=jnp.float32) * (H ** -0.5)
    wk = jax.random.normal(ks[3], (H, H), dtype=jnp.float32) * (H ** -0.5)
    wv = jax.random.normal(ks[4], (H, H), dtype=jnp.float32) * (H ** -0.5)
    bq = 0.01 * jax.random.normal(ks[5], (1, H), dtype=jnp.float32)
    bk = 0.01 * jax.random.normal(ks[6], (1, H), dtype=jnp.float32)
    bv = 0.01 * jax.random.normal(ks[7], (1, H), dtype=jnp.float32)

    out = reorder_forward(text_embedding, tokeners, wq, bq, wk, bk, wv, bv)
    out = jax.block_until_ready(out)

    ref = reorder_reference(text_embedding, tokeners, wq, bq, wk, bk, wv, bv)
    assert out.shape == (B, L, H), out.shape
    # Tolerance reflects bf16 MXU operands (f32 accumulation, exact f32 softmax);
    # typical observed error at these magnitudes is a few 1e-3.
    assert jnp.allclose(out, ref, atol=2e-2, rtol=2e-2), "mismatch vs reference"

    print("KERNEL_OK")
</pallas_src>

<mosaic_0001>
module attributes {stable_mosaic.version = 11 : i64} {
  func.func @_reorder_kernel(%arg0: i32, %arg1: memref<8x32xf32, #tpu.memory_space<vmem>>, %arg2: memref<8x32xbf16, #tpu.memory_space<vmem>>, %arg3: memref<8x32xf32, #tpu.memory_space<vmem>>, %arg4: memref<32x32xbf16, #tpu.memory_space<vmem>>, %arg5: memref<32x32xbf16, #tpu.memory_space<vmem>>, %arg6: memref<1x32xf32, #tpu.memory_space<vmem>>, %arg7: memref<1x32xf32, #tpu.memory_space<vmem>>, %arg8: memref<1x8x32xf32, #tpu.memory_space<vmem>>) attributes {dimension_semantics = [#tpu.dimension_semantics<parallel>], iteration_bounds = array<i64: 2>, scalar_prefetch = 0 : i64, scratch_operands = 0 : i64, tpu.core_type = #tpu.core_type<tc>, window_params = [{pipeline_mode = #tpu.pipeline_mode<synchronous>, transform_indices = @transform_0, window_bounds = array<i64: 8, 32>}, {pipeline_mode = #tpu.pipeline_mode<synchronous>, transform_indices = @transform_1, window_bounds = array<i64: 8, 32>}, {transform_indices = @transform_2, window_bounds = array<i64: 8, 32>}, {pipeline_mode = #tpu.pipeline_mode<synchronous>, transform_indices = @transform_3, window_bounds = array<i64: 32, 32>}, {pipeline_mode = #tpu.pipeline_mode<synchronous>, transform_indices = @transform_4, window_bounds = array<i64: 32, 32>}, {pipeline_mode = #tpu.pipeline_mode<synchronous>, transform_indices = @transform_5, window_bounds = array<i64: 1, 32>}, {pipeline_mode = #tpu.pipeline_mode<synchronous>, transform_indices = @transform_6, window_bounds = array<i64: 1, 32>}, {transform_indices = @transform_7, window_bounds = array<i64: 1, 8, 32>}]} {
    %c0 = arith.constant 0 : index
    %c0_0 = arith.constant 0 : index
    %0 = vector.load %arg3[%c0, %c0_0] : memref<8x32xf32, #tpu.memory_space<vmem>>, vector<8x32xf32>
    %1 = arith.truncf %0 : vector<8x32xf32> to vector<8x32xbf16>
    %c0_1 = arith.constant 0 : index
    %c0_2 = arith.constant 0 : index
    %2 = vector.load %arg4[%c0_1, %c0_2] : memref<32x32xbf16, #tpu.memory_space<vmem>>, vector<32x32xbf16>
    %cst = arith.constant dense<0.000000e+00> : vector<8x32xf32>
    %3 = tpu.matmul %1, %2, %cst {dimension_numbers = #tpu.dot_dimension_numbers<[1], [0], [0], [1], [0, 0, 1, 1], [], []>} : vector<8x32xbf16>, vector<32x32xbf16>, vector<8x32xf32> -> vector<8x32xf32>
    %c0_3 = arith.constant 0 : index
    %c0_4 = arith.constant 0 : index
    %4 = vector.load %arg6[%c0_3, %c0_4] : memref<1x32xf32, #tpu.memory_space<vmem>>, vector<1x32xf32>
    %5 = vector.broadcast %4 : vector<1x32xf32> to vector<8x32xf32>
    %6 = arith.addf %3, %5 : vector<8x32xf32>
    %c0_5 = arith.constant 0 : index
    %c0_6 = arith.constant 0 : index
    %7 = vector.load %arg5[%c0_5, %c0_6] : memref<32x32xbf16, #tpu.memory_space<vmem>>, vector<32x32xbf16>
    %cst_7 = arith.constant dense<0.000000e+00> : vector<8x32xf32>
    %8 = tpu.matmul %1, %7, %cst_7 {dimension_numbers = #tpu.dot_dimension_numbers<[1], [0], [0], [1], [0, 0, 1, 1], [], []>} : vector<8x32xbf16>, vector<32x32xbf16>, vector<8x32xf32> -> vector<8x32xf32>
    %c0_8 = arith.constant 0 : index
    %c0_9 = arith.constant 0 : index
    %9 = vector.load %arg7[%c0_8, %c0_9] : memref<1x32xf32, #tpu.memory_space<vmem>>, vector<1x32xf32>
    %10 = vector.broadcast %9 : vector<1x32xf32> to vector<8x32xf32>
    %11 = arith.addf %8, %10 : vector<8x32xf32>
    %12 = vector.shape_cast %6 : vector<8x32xf32> to vector<1x8x32xf32>
    %13 = arith.truncf %12 : vector<1x8x32xf32> to vector<1x8x32xbf16>
    %14 = vector.shape_cast %11 : vector<8x32xf32> to vector<1x8x32xf32>
    %15 = arith.truncf %14 : vector<1x8x32xf32> to vector<1x8x32xbf16>
    %c0_10 = arith.constant 0 : index
    %c0_11 = arith.constant 0 : index
    %16 = vector.load %arg2[%c0_10, %c0_11] : memref<8x32xbf16, #tpu.memory_space<vmem>>, vector<8x32xbf16>
    %17 = vector.shape_cast %16 : vector<8x32xbf16> to vector<1x8x32xbf16>
    "tpu.trace_start"() <{level = 10 : i32, message = "blh,bsh->bls"}> : () -> ()
    %cst_12 = arith.constant dense<0.000000e+00> : vector<1x8x8xf32>
    %18 = tpu.matmul %17, %13, %cst_12 {dimension_numbers = #tpu.dot_dimension_numbers<[2], [2], [1], [1], [0, 0, 0, 1, 1, 1], [0], [0]>} : vector<1x8x32xbf16>, vector<1x8x32xbf16>, vector<1x8x8xf32> -> vector<1x8x8xf32>
    "tpu.trace_stop"() : () -> ()
    %cst_13 = arith.constant 0.176776692 : f32
    %19 = vector.broadcast %cst_13 : f32 to vector<1x8x8xf32>
    %20 = arith.mulf %18, %19 : vector<1x8x8xf32>
    %cst_14 = arith.constant dense<0xFF800000> : vector<1x8xf32>
    %21 = vector.multi_reduction <maximumf>, %20, %cst_14 [2] : vector<1x8x8xf32> to vector<1x8xf32>
    %22 = vector.shape_cast %21 : vector<1x8xf32> to vector<1x8x1xf32>
    %23 = vector.broadcast %22 : vector<1x8x1xf32> to vector<1x8x8xf32>
    %24 = arith.subf %20, %23 : vector<1x8x8xf32>
    %25 = math.exp %24 : vector<1x8x8xf32>
    %cst_15 = arith.constant dense<0.000000e+00> : vector<1x8xf32>
    %26 = vector.multi_reduction <add>, %25, %cst_15 [2] : vector<1x8x8xf32> to vector<1x8xf32>
    %27 = vector.shape_cast %26 : vector<1x8xf32> to vector<1x8x1xf32>
    %28 = vector.broadcast %27 : vector<1x8x1xf32> to vector<1x8x8xf32>
    %29 = arith.divf %25, %28 : vector<1x8x8xf32>
    %30 = arith.truncf %29 : vector<1x8x8xf32> to vector<1x8x8xbf16>
    "tpu.trace_start"() <{level = 10 : i32, message = "bls,bsh->blh"}> : () -> ()
    %cst_16 = arith.constant dense<0.000000e+00> : vector<1x8x32xf32>
    %31 = tpu.matmul %30, %15, %cst_16 {dimension_numbers = #tpu.dot_dimension_numbers<[2], [1], [1], [2], [0, 0, 0, 1, 1, 2], [0], [0]>} : vector<1x8x8xbf16>, vector<1x8x32xbf16>, vector<1x8x32xf32> -> vector<1x8x32xf32>
    "tpu.trace_stop"() : () -> ()
    %c0_17 = arith.constant 0 : index
    %c0_18 = arith.constant 0 : index
    %32 = vector.load %arg1[%c0_17, %c0_18] : memref<8x32xf32, #tpu.memory_space<vmem>>, vector<8x32xf32>
    %33 = tpu.iota {dimensions = array<i32: 0>} : vector<8x32xi32>
    %34 = vector.shape_cast %32 : vector<8x32xf32> to vector<1x8x32xf32>
    %35 = vector.shape_cast %33 : vector<8x32xi32> to vector<1x8x32xi32>
    %c1_i32 = arith.constant 1 : i32
    %36 = vector.broadcast %c1_i32 : i32 to vector<1x8x32xi32>
    %37 = arith.cmpi sge, %35, %36 : vector<1x8x32xi32>
    %cst_19 = arith.constant 0.000000e+00 : f32
    %38 = vector.broadcast %cst_19 : f32 to vector<1x8x32xf32>
    %39 = arith.select %37, %31, %38 : vector<1x8x32xi1>, vector<1x8x32xf32>
    %40 = arith.addf %34, %39 : vector<1x8x32xf32>
    %c0_20 = arith.constant 0 : index
    %c0_21 = arith.constant 0 : index
    %c0_22 = arith.constant 0 : index
    %41 = vector.load %arg8[%c0_20, %c0_21, %c0_22] : memref<1x8x32xf32, #tpu.memory_space<vmem>>, vector<1x8x32xf32>
    tpu.vector_store %arg8[%c0_20, %c0_21, %c0_22], %40 {strides = array<i32>} : memref<1x8x32xf32, #tpu.memory_space<vmem>>, vector<1x8x32xf32>,
    return
  }
  func.func @transform_0(%arg0: i32) -> (i32, i32) {
    %c0_i32 = arith.constant 0 : i32
    %c0_i32_0 = arith.constant 0 : i32
    %c0_i32_1 = arith.constant 0 : i32
    return %c0_i32, %c0_i32_0 : i32, i32
  }
  func.func @transform_1(%arg0: i32) -> (i32, i32) {
    %c0_i32 = arith.constant 0 : i32
    %c0_i32_0 = arith.constant 0 : i32
    %c0_i32_1 = arith.constant 0 : i32
    return %c0_i32, %c0_i32_0 : i32, i32
  }
  func.func @transform_2(%arg0: i32) -> (i32, i32) {
    %c0_i32 = arith.constant 0 : i32
    %c0_i32_0 = arith.constant 0 : i32
    return %arg0, %c0_i32 : i32, i32
  }
  func.func @transform_3(%arg0: i32) -> (i32, i32) {
    %c0_i32 = arith.constant 0 : i32
    %c0_i32_0 = arith.constant 0 : i32
    %c0_i32_1 = arith.constant 0 : i32
    return %c0_i32, %c0_i32_0 : i32, i32
  }
  func.func @transform_4(%arg0: i32) -> (i32, i32) {
    %c0_i32 = arith.constant 0 : i32
    %c0_i32_0 = arith.constant 0 : i32
    %c0_i32_1 = arith.constant 0 : i32
    return %c0_i32, %c0_i32_0 : i32, i32
  }
  func.func @transform_5(%arg0: i32) -> (i32, i32) {
    %c0_i32 = arith.constant 0 : i32
    %c0_i32_0 = arith.constant 0 : i32
    %c0_i32_1 = arith.constant 0 : i32
    return %c0_i32, %c0_i32_0 : i32, i32
  }
  func.func @transform_6(%arg0: i32) -> (i32, i32) {
    %c0_i32 = arith.constant 0 : i32
    %c0_i32_0 = arith.constant 0 : i32
    %c0_i32_1 = arith.constant 0 : i32
    return %c0_i32, %c0_i32_0 : i32, i32
  }
  func.func @transform_7(%arg0: i32) -> (i32, i32, i32) {
    %c0_i32 = arith.constant 0 : i32
    %c0_i32_0 = arith.constant 0 : i32
    %c0_i32_1 = arith.constant 0 : i32
    return %arg0, %c0_i32, %c0_i32_0 : i32, i32, i32
  }
}

</mosaic_0001>

<bundles_post_ra>
// kernel: tpu_custom_call.1
= control target key start
LH: loop header
LB: loop body
LE: loop exit
PB: predicated region body
PF: predicated region fallthrough
CT: control target
= control target key end

     0   :  { %12 = vsyncpa [#allocation3], 0  ;;  %s1471_s0 = inlined_call_operand.hbm [shape: f32[8,32], index: 0, kind: input, shape index: {}]   ;;  %s1472_s1 = inlined_call_operand.hbm [shape: bf16[8,32], index: 1, kind: input, shape index: {}]   ;;  %s1473_s2 = inlined_call_operand.hbm [shape: f32[16,32], index: 2, kind: input, shape index: {}]   ;;  %s1474_s3 = inlined_call_operand.hbm [shape: bf16[32,32], index: 3, kind: input, shape index: {}]   ;;  %s1475_s4 = inlined_call_operand.hbm [shape: bf16[32,32], index: 4, kind: input, shape index: {}]   ;;  %s1476_s5 = inlined_call_operand.vmem [shape: f32[1,32], index: 5, kind: input, shape index: {}]   ;;  %s1477_s6 = inlined_call_operand.vmem [shape: f32[1,32], index: 6, kind: input, shape index: {}]   ;;  %s1478_s7 = inlined_call_operand.hbm [shape: f32[2,8,32], index: 7, kind: output, shape index: {}]  }
   0x1   :  { %13 = vsyncpa [#allocation6], 0 }
   0x2   :  { %14 = vsyncpa [#allocation10], 0 }
   0x3   :  { %15 = vsyncpa [#allocation4], 0 }
   0x4   :  { %17 = vsyncpa [#allocation4 + $0x1], 0  ;;  %s1161_s24 = smov 0   ;;  %s1163_s25 = smov 0  }
   0x5   :  { %s1165_s26 = smov 0   ;;  %s1167_s27 = smov 0  }
   0x6 LB: > { %s1111_s28 = smov [#allocation2]   ;;  %s1182_s30 = sadd.s32 4294967295, %s1109_s27   ;;  %s1109_s27 = sphi %s1167_s27, %s1506_s27   ;;  %s1105_s26 = sphi %s1165_s26, %s1505_s26   ;;  %s1101_s25 = sphi %s1163_s25, %s1504_s25   ;;  %s1097_s24 = sphi %s1161_s24, %s1503_s24  }
   0x7   : > { %s219_s29 = sshll.u32 %s1111_s28, 4  ;;  %p719_p0 = scmp.ge.s32.totalorder %s1109_s27, 1  ;;  %s1188_s29 = int_to_ptr.vmem [resolvable:$true] %s219_s29 }
   0x8   : > { %p1479_p1 = scmp.eq.s32.totalorder %s1182_s30, 0  ;;  %p206_p3 = scmp.lt.s32.totalorder %s1109_s27, 3 }
   0x9   : > { %s1112_s9 = smov [#allocation5]   ;;  %s1113_s11 = smov [#allocation8]  }
   0xa   : > { %p1191_p5 = pnand %p719_p0, %p206_p3  ;;  %s230_s10 = sshll.u32 %s1112_s9, 4  ;;  %s1197_s10 = int_to_ptr.vmem [resolvable:$true] %s230_s10 }
   0xb   : > { %s240_s12 = sshll.u32 %s1113_s11, 4  ;;  %s1114_s14 = smov [#allocation9]   ;;  %s1205_s12 = int_to_ptr.vmem [resolvable:$true] %s240_s12 }
   0xc   : > { %s1482_s8 = scalar_select %p1191_p5, 1, 0 }
   0xd   : > { %p806_p6 = pneg %p1191_p5  ;;  %s1207_s15 = sshll.u32 %s1114_s14, 4  ;;  %s254_s15 = int_to_ptr.vmem [resolvable:$true] %s1207_s15 }
   0xe   : > { %s885_s18 = scalar_lea.hbm %s1471_s0, 128 }
   0xf   : > { %p1201_p7 = pnand %p806_p6, %p1479_p1  ;;  %p886_p8 = scmp.ne.s32.totalorder %s1471_s0, %s885_s18 }
  0x10   : > { %p892_p12 = scmp.lt.u32.totalorder %s885_s18, %s1471_s0 }
  0x11   : > { %p1217_p9 = pneg %p1201_p7 }
  0x13   : > { %p888_p10 = pnand %p1217_p9, %p886_p8 }
  0x15   : > { %p889_p11 = pneg %p888_p10 }
  0x17   : > { %p894_p13 = pnand %p892_p12, %p889_p11 }
  0x19   : > { %897 = shalt.err (!%p894_p13)
}
  0x1a   : > { %s898_s28 = scalar_lea.vmem %s1188_s29, 128  ;;  %p906_p4 = scmp.lt.s32.totalorder %s1188_s29, %s1188_s29 }
  0x1b   : > { %p899_p0 = scmp.ne.s32.totalorder %s1188_s29, %s898_s28  ;;  %p907_p1 = scmp.lt.s32.totalorder %s898_s28, %s898_s28 }
  0x1d   : > { %p901_p3 = pnand %p899_p0, %p1217_p9  ;;  %p908_p8 = por %p907_p1, %p906_p4 }
  0x1f   : > { %p902_p6 = pneg %p901_p3 }
  0x21   : > { %p909_p10 = pnand %p908_p8, %p902_p6 }
  0x23   : > { %912 = shalt.err (!%p909_p10)
}
  0x24   : > { %809 = dma.hbm_to_vmem [thread:$0]  (!%p1201_p7), %s1471_s0, 128, %s1188_s29, [#allocation3]  }
  0x25   : > { %s913_s17 = scalar_lea.hbm %s1472_s1, 64 }
  0x26   : > { %p914_p11 = scmp.ne.s32.totalorder %s1472_s1, %s913_s17  ;;  %p920_p12 = scmp.lt.u32.totalorder %s913_s17, %s1472_s1 }
  0x28   : > { %p916_p1 = pnand %p914_p11, %p1217_p9 }
  0x2a   : > { %p917_p4 = pneg %p916_p1 }
  0x2c   : > { %p922_p13 = pnand %p920_p12, %p917_p4 }
  0x2e   : > { %925 = shalt.err (!%p922_p13)
}
  0x2f   : > { %s926_s29 = scalar_lea.vmem %s1197_s10, 64  ;;  %p934_p8 = scmp.lt.s32.totalorder %s1197_s10, %s1197_s10 }
  0x30   : > { %p927_p0 = scmp.ne.s32.totalorder %s1197_s10, %s926_s29  ;;  %p935_p10 = scmp.lt.s32.totalorder %s926_s29, %s926_s29 }
  0x32   : > { %p929_p3 = pnand %p927_p0, %p1217_p9  ;;  %p936_p11 = por %p935_p10, %p934_p8 }
  0x34   : > { %p930_p6 = pneg %p929_p3 }
  0x36   : > { %p937_p1 = pnand %p936_p11, %p930_p6 }
  0x38   : > { %940 = shalt.err (!%p937_p1)
}
  0x39   : > { %812 = dma.hbm_to_vmem [thread:$0]  (!%p1201_p7), %s1472_s1, 64, %s1197_s10, [#allocation6]  }
  0x3a   : > { %s941_s14 = scalar_lea.hbm %s1474_s3, 256 }
  0x3b   : > { %p942_p4 = scmp.ne.s32.totalorder %s1474_s3, %s941_s14  ;;  %p948_p0 = scmp.lt.u32.totalorder %s941_s14, %s1474_s3 }
  0x3d   : > { %p944_p12 = pnand %p942_p4, %p1217_p9 }
  0x3f   : > { %p945_p13 = pneg %p944_p12 }
  0x41   : > { %p950_p3 = pnand %p948_p0, %p945_p13 }
  0x43   : > { %953 = shalt.err (!%p950_p3)
}
  0x44   : > { %s954_s10 = scalar_lea.vmem %s1205_s12, 256  ;;  %p962_p11 = scmp.lt.s32.totalorder %s1205_s12, %s1205_s12 }
  0x45   : > { %p955_p6 = scmp.ne.s32.totalorder %s1205_s12, %s954_s10  ;;  %p963_p1 = scmp.lt.s32.totalorder %s954_s10, %s954_s10 }
  0x47   : > { %p957_p8 = pnand %p955_p6, %p1217_p9  ;;  %p964_p4 = por %p963_p1, %p962_p11 }
  0x49   : > { %p958_p10 = pneg %p957_p8 }
  0x4b   : > { %p965_p12 = pnand %p964_p4, %p958_p10 }
  0x4d   : > { %968 = shalt.err (!%p965_p12)
}
  0x4e   : > { %s1115_s20 = smov 64   ;;  %s1116_s22 = smov 4  }
  0x4f   : > { %815 = dma.hbm_to_vmem [thread:$0]  (!%p1201_p7), %s1474_s3, 256, %s1205_s12, [#allocation6], %s1115_s20, %s1115_s20, %s1116_s22  }
  0x50   : > { %s969_s11 = scalar_lea.hbm %s1475_s4, 256 }
  0x51   : > { %p970_p13 = scmp.ne.s32.totalorder %s1475_s4, %s969_s11  ;;  %p976_p6 = scmp.lt.u32.totalorder %s969_s11, %s1475_s4 }
  0x53   : > { %p972_p0 = pnand %p970_p13, %p1217_p9 }
  0x55   : > { %p973_p3 = pneg %p972_p0 }
  0x57   : > { %p978_p8 = pnand %p976_p6, %p973_p3 }
  0x59   : > { %981 = shalt.err (!%p978_p8)
}
  0x5a   : > { %s982_s19 = scalar_lea.vmem %s254_s15, 256  ;;  %p990_p4 = scmp.lt.s32.totalorder %s254_s15, %s254_s15 }
  0x5b   : > { %p983_p10 = scmp.ne.s32.totalorder %s254_s15, %s982_s19  ;;  %p991_p12 = scmp.lt.s32.totalorder %s982_s19, %s982_s19 }
  0x5d   : > { %p985_p11 = pnand %p983_p10, %p1217_p9  ;;  %p992_p2 = por %p991_p12, %p990_p4 }
  0x5f   : > { %p986_p1 = pneg %p985_p11 }
  0x61   : > { %p993_p5 = pnand %p992_p2, %p986_p1 }
  0x63   : > { %996 = shalt.err (!%p993_p5)
}
  0x64   : > { %818 = dma.hbm_to_vmem [thread:$0]  (!%p1201_p7), %s1475_s4, 256, %s254_s15, [#allocation10], %s1115_s20, %s1115_s20, %s1116_s22  }
  0x65   : > { %s718_s13 = sadd.s32 4294967294, %s1109_s27   ;;  %s1305_s21 = sadd.s32 1, %s1109_s27  }
  0x66   : > { %s72_s29 = sadd.s32 1, %s1105_s26  ;;  %s69_s23 = ssub.s32 %s1109_s27, %s1305_s21 }
  0x67   : > { %p79_p2 = scmp.ne.s32.totalorder %s1105_s26, %s1101_s25  ;;  %p70_p5 = scmp.eq.s32.totalorder %s69_s23, 0 }
  0x68   : > { %p80_p9 = scmp.eq.s32.totalorder %s1109_s27, 0  ;;  %p85_p13 = scmp.ne.s32.totalorder %s1101_s25, %s1097_s24 }
  0x69   : > { %p1485_p0 = scmp.eq.s32.totalorder %s1182_s30, 1  ;;  %p1487_p6 = scmp.eq.s32.totalorder %s1182_s30, 0 }
  0x6a   : > { %s1322_s9 = scalar_select %p70_p5, %s1105_s26, %s72_s29  }
  0x6b   : > { %p1317_p3 = por %p1485_p0, %p79_p2  ;;  %p81_p7 = por %p80_p9, %p79_p2 }
  0x6c   : > { %p1326_p8 = por %p1487_p6, %p85_p13  ;;  %p199_p10 = scmp.eq.s32.totalorder %s718_s13, 1 }
  0x6d   : > { %s1486_s28 = scalar_select %p1317_p3, 1, 0 }
  0x6e   : > { %p831_p11 = scmp.lt.s32.totalorder %s1109_s27, 2  ;;  %s273_s20 = sand.u32 1, %s1109_s27  }
  0x6f   : > { %s275_s22 = sand.u32 1, %s1105_s26   ;;  %p1333_p1 = por %p199_p10, %p85_p13 }
  0x70   : > { %s725_s14 = sshll.u32 %s275_s22, 3  ;;  %s726_s16 = sshll.u32 %s1109_s27, 7 }
  0x71   : > { %s1489_s11 = scalar_select %p1333_p1, 1, 0 }
  0x72   : > { %s1341_s19 = scalar_lea.hbm %s1473_s2, %s726_s16  ;;  %s277_s12 = scalar_lea.vmem [#allocation7], %s725_s14 }
  0x73   : > { %s284_s10 = sshll.u32 %s277_s12, 4  ;;  %p1343_p4 = pnand %p831_p11, %p81_p7  ;;  %s1347_s10 = int_to_ptr.vmem [resolvable:$true] %s284_s10 }
  0x74   : > { %s274_s29 = scalar_lea.sflag [#allocation3], %s273_s20  ;;  %s997_s23 = scalar_lea.hbm %s1341_s19, 128 }
  0x75   : > { %p998_p12 = scmp.ne.s32.totalorder %s1341_s19, %s997_s23  ;;  %p999_p2 = pneg %p1343_p4 }
  0x76   : > { %s1002_s16 = scalar_lea.hbm %s1473_s2, 256  ;;  %p1003_p13 = scmp.lt.u32.totalorder %s1341_s19, %s1473_s2 }
  0x77   : > { %p1000_p5 = pnand %p999_p2, %p998_p12  ;;  %p1004_p0 = scmp.lt.u32.totalorder %s1002_s16, %s997_s23 }
  0x78   : > { %p1006_p6 = scmp.lt.u32.totalorder %s997_s23, %s1341_s19 }
  0x79   : > { %p1001_p9 = pneg %p1000_p5  ;;  %p1005_p7 = por %p1004_p0, %p1003_p13 }
  0x7b   : > { %p1007_p10 = por %p1006_p6, %p1005_p7 }
  0x7d   : > { %p1008_p11 = pnand %p1007_p10, %p1001_p9 }
  0x7f   : > { %1011 = shalt.err (!%p1008_p11)
}
  0x80   : > { %s1012_s20 = scalar_lea.vmem %s1347_s10, 128  ;;  %s1117_s12 = smov [#allocation7]  }
  0x81   : > { %p1013_p12 = scmp.ne.s32.totalorder %s1347_s10, %s1012_s20  ;;  %s1017_s22 = sshll.u32 %s1117_s12, 4  ;;  %s1018_s22 = int_to_ptr.vmem [resolvable:$false] %s1017_s22 }
  0x82   : > { %s1019_s14 = scalar_lea.vmem %s1018_s22, 256  ;;  %p1020_p3 = scmp.lt.s32.totalorder %s1347_s10, %s1018_s22 }
  0x83   : > { %p1015_p5 = pnand %p1013_p12, %p999_p2  ;;  %p1021_p13 = scmp.lt.s32.totalorder %s1019_s14, %s1012_s20 }
  0x85   : > { %p1016_p1 = pneg %p1015_p5  ;;  %p1022_p0 = por %p1021_p13, %p1020_p3 }
  0x87   : > { %p1023_p7 = pnand %p1022_p0, %p1016_p1 }
  0x89   : > { %1026 = shalt.err (!%p1023_p7)
}
  0x8a   : > { %822 = dma.hbm_to_vmem [thread:$0]  (!%p1343_p4), %s1341_s19, 128, %s1347_s10, %s274_s29  }
  0x8b   : > { %p1491_p9 = scmp.ne.s32.totalorder %s1482_s8, 0 }
  0x8c   : > { %p1492_p2 = scmp.eq.s32.totalorder (!%p1491_p9), %s1182_s30, 0 }
  0x8d   : > { %293 = sbr.rel (%p1491_p9) target bundleno = 1155 (0x483), region = 48 }
  0x94   : > { %1072 = dma.done.wait (%p1492_p2), [#allocation3], 128   ;;  %p1493_p6 = pmov %p1492_p2 }
  0x95   : > { %p1494_p10 = pmov %p1492_p2 }
  0x96   : > { %1074 = vsyncadd (%p1493_p6), [#allocation3], 4294967168 }
  0x97   : > { %1076 = dma.done.wait (%p1494_p10), [#allocation6], 64   ;;  %p1495_p3 = pmov %p1492_p2 }
  0x98   : > { %s303_s19 = sand.u32 1, %s1182_s30   ;;  %s305_s10 = sand.u32 1, %s1101_s25  }
  0x99   : > { %1078 = vsyncadd (%p1495_p3), [#allocation6], 4294967232  ;;  %s1388_s8 = sshll.u32 %s305_s10, 3  ;;  %s304_s13 = scalar_lea.sflag [#allocation3], %s303_s19 }
  0x9a   : > { %s307_s29 = scalar_lea.vmem [#allocation7], %s1388_s8 }
  0x9b   : > { %1080 = dma.done.wait (%p1326_p8), %s304_s13, 128  }
  0x9c   : > { %1082 = vsyncadd (%p1326_p8), %s304_s13, 4294967168  ;;  %p1496_p1 = pmov %p1492_p2 }
  0x9e   : > { %1084 = dma.done.wait (%p1496_p1), [#allocation6], 256   ;;  %p1497_p4 = pmov %p1496_p1 }
  0x9f   : > { %p1498_p11 = pmov %p1496_p1 }
  0xa0   : > { %1086 = vsyncadd (%p1497_p4), [#allocation6], 4294967040 }
  0xa1   : > { %1088 = dma.done.wait (%p1498_p11), [#allocation10], 256   ;;  %p1499_p12 = pmov %p1496_p1 }
  0xa2   : > { %v1118_v0 = vmov 0.0   ;;  %vm1119_vm0 = vmmov 0   ;;  %v877_v1 = vld [vmem:[#allocation8] sm:$0xff]   ;;  %v878_v2 = vld [vmem:[#allocation8 + $0x8] sm:$0xff]   ;;  %v347_v3 = vld [vmem:[%s307_s29] sm:$0xff]  ;;  %vm372_vm1 = vcmask 261120   ;;  %v590_v39 = vlaneseq }
  0xa3   : > { %1090 = vsyncadd (%p1499_p12), [#allocation10], 4294967040  ;;  %758 = vmatprep.subr.bf16.mxu0 %v1118_v0  ;;  %762 = vmatprep.mubr.msk.bf16.mxu0 %vm1119_vm0, %v1118_v0  ;;  %v348_v4 = vpack.c.bf16 %v347_v3, %v347_v3  ;;  %v734_v5 = vld [vmem:[%s1476_s5] ss:$0 sm:$0xff]  ;;  %v481_v13 = vld [vmem:[#allocation5] sm:$0xf] }
  0xa4   : > { %766 = vmatprep.subr.bf16.mxu1 %v1118_v0  ;;  %770 = vmatprep.mubr.msk.bf16.mxu1 %vm1119_vm0, %v1118_v0  ;;  %v879_v14 = vld [vmem:[#allocation9] sm:$0xff]   ;;  %v880_v15 = vld [vmem:[#allocation9 + $0x8] sm:$0xff]   ;;  %vm529_vm2 = vcmask 64512   ;;  %v738_v22 = vld [vmem:[%s1477_s6] ss:$0 sm:$0xff]  ;;  %vm545_vm3 = vcmask 1043456  }
  0xa5   : > { %759 = vmatpush3.bf16.msra.mxu0 %v877_v1  ;;  %767 = vmatpush3.bf16.msra.mxu1 %v879_v14  ;;  %v591_v40 = vshrl.u32 %v590_v39, 7  ;;  %v589_v41 = vld [vmem:[#allocation2] sm:$0xff]  ;;  %s745_s18 = sshll.u32 %s1182_s30, 7  ;;  %s345_s20 = scalar_lea.vmem [#allocation11], %s1388_s8 }
  0xa6   : > { %760 = vmatprep.subr.bf16.mxu0 %v1118_v0  ;;  %768 = vmatprep.subr.bf16.mxu1 %v1118_v0  ;;  %s610_s12 = sshll.u32 %s345_s20, 4  ;;  %s1425_s19 = scalar_lea.hbm %s1478_s7, %s745_s18  ;;  %s1427_s12 = int_to_ptr.vmem [resolvable:$true] %s610_s12 }
  0xa7   : > { %vm592_vm4 = vcmp.ge.s32.totalorder %v591_v40, 1  ;;  %s597_s30 = scalar_lea.sflag [#allocation4], %s305_s10  ;;  %s1027_s8 = scalar_lea.vmem %s1427_s12, 128 }
  0xa8   : > { %p1028_p8 = scmp.ne.s32.totalorder %s1427_s12, %s1027_s8  ;;  %p1500_p5 = scmp.ne.s32.totalorder %s1486_s28, 0 }
  0xa9   : > { %761 = vmatpush3.bf16.msra.mxu0 %v878_v2  ;;  %769 = vmatpush3.bf16.msra.mxu1 %v880_v15  ;;  %s1120_s13 = smov [#allocation11]  }
  0xaa   : > { %774 = vmatprep.subr.bf16.mxu0 %v1118_v0  ;;  %780 = vmatprep.subr.bf16.mxu1 %v1118_v0  ;;  %p1029_p13 = pnand %p1028_p8, %p1500_p5  ;;  %s1031_s29 = sshll.u32 %s1120_s13, 4  ;;  %s1032_s29 = int_to_ptr.vmem [resolvable:$false] %s1031_s29 }
  0xab   : > { %s1033_s15 = scalar_lea.vmem %s1032_s29, 256  ;;  %p1034_p7 = scmp.lt.s32.totalorder %s1427_s12, %s1032_s29 }
  0xac   : > { %763 = vmatmul.mubr.msk.bf16.vlgmr.msra.gmra.mrb[0].mxu0 %vm372_vm1, %v348_v4  ;;  %771 = vmatmul.mubr.msk.bf16.vlgmr.msra.gmra.mrb[0].mxu1 %vm372_vm1, %v348_v4  ;;  %p1030_p0 = pneg %p1029_p13  ;;  %p1035_p9 = scmp.lt.s32.totalorder %s1033_s15, %s1027_s8 }
  0xad   : > { %776 = vmatprep.mubr.msk.bf16.mxu0 %vm1119_vm0, %v1118_v0  ;;  %782 = vmatprep.mubr.msk.bf16.mxu1 %vm1119_vm0, %v1118_v0 }
  0xae   : > { %p1036_p2 = por %p1035_p9, %p1034_p7 }
  0xb0   : > { %p1037_p6 = pnand %p1036_p2, %p1030_p0 }
 0x17f   : > { %v410_v6 = vpop.f32.mrb[0].mxu0  ;;  %v473_v23 = vpop.f32.mrb[0].mxu1 }
 0x180   : > { %v411_v7 = vadd.f32 %v734_v5, %v410_v6  ;;  %v764_v8 = vpop.f32.mrb[1].mxu0  ;;  %v474_v24 = vadd.f32 %v738_v22, %v473_v23  ;;  %v772_v25 = vpop.f32.mrb[1].mxu1 }
 0x181   : > { %v413_v9 = vpop.f32.mrb[2].mxu0  ;;  %v476_v26 = vpop.f32.mrb[2].mxu1 }
 0x182   : > { %v479_v10 = vpack.c.bf16 %v411_v7, %v411_v7  ;;  %v765_v11 = vpop.f32.mrb[3].mxu0  ;;  %v480_v27 = vpack.c.bf16 %v474_v24, %v474_v24  ;;  %v773_v28 = vpop.f32.mrb[3].mxu1 }
 0x184   : > { %v486_v12 = vsel %vm372_vm1, %v479_v10, 0  ;;  %v547_v29 = vsel %vm545_vm3, %v480_v27, 0 }
 0x185   : > { %775 = vmatpush3.bf16.xpose.msra.mxu0 %v486_v12  ;;  %781 = vmatpush3.bf16.msra.mxu1 %v547_v29 }
 0x18c   : > { %777 = vmatmul.mubr.msk.bf16.vlgmr.msra.gmra.mrb[4].mxu0 %vm372_vm1, %v481_v13 }
 0x25f   : > { %v522_v16 = vpop.f32.mrb[4].mxu0 }
 0x260   : > { %v528_v17 = vmul.f32 0.17677669, %v522_v16  ;;  %v778_v18 = vpop.f32.mrb[5].mxu0 }
 0x261   : > { %v525_v19 = vpop.f32.mrb[6].mxu0 }
 0x262   : > { %v779_v20 = vpop.f32.mrb[7].mxu0  ;;  %v530_v21 = vsel %vm529_vm2, %v528_v17, -inf }
 0x263   : > { %531 = vmax.xlane.f32.xlu0 %v530_v21 }
 0x2f0   : > { %v532_v30 = vpop.xlane.xlu0 %531 }
 0x2f1   : > { %v533_v31 = vsub.f32 %v528_v17, %v532_v30 }
 0x2f3   : > { %v534_v32 = vmul.f32 1.442695, %v533_v31 }
 0x2f5   : > { %881 = vpow2.f32 %v534_v32 }
 0x2ff   : > { %v882_v33 = vpop.eup %881 }
 0x300   : > { %v536_v34 = vsel %vm529_vm2, %v882_v33, 0.0 }
 0x301   : > { %537 = vadd.xlane.f32.xlu0 %v536_v34 }
 0x38e   : > { %v538_v35 = vpop.xlane.xlu0 %537 }
 0x38f   : > { %883 = vrcp.f32 %v538_v35 }
 0x399   : > { %v884_v36 = vpop.eup %883 }
 0x39a   : > { %v540_v37 = vmul.f32 %v884_v36, %v882_v33 }
 0x39c   : > { %v541_v38 = vpack.c.bf16 %v540_v37, %v540_v37 }
 0x39e   : > { %783 = vmatmul.mubr.msk.bf16.vlgmr.msra.gmra.mrb[4].mxu1 %vm529_vm2, %v541_v38 }
 0x471   : > { %v583_v42 = vpop.f32.mrb[4].mxu1 }
 0x472   : > { %v593_v43 = vsel %vm592_vm4, %v583_v42, 0.0  ;;  %v784_v44 = vpop.f32.mrb[5].mxu1 }
 0x473   : > { %v594_v45 = vadd.f32 %v593_v43, %v589_v41  ;;  %v586_v46 = vpop.f32.mrb[6].mxu1 }
 0x474   : > { %v785_v47 = vpop.f32.mrb[7].mxu1 }
 0x475   : > { %595 = vst.msk [vmem:[%s345_s20] sm:$0xff] %vm372_vm1, %v594_v45 }
 0x476   : > { %1040 = shalt.err (!%p1037_p6)
}
 0x477   : > { %s1041_s10 = scalar_lea.hbm %s1425_s19, 128  ;;  %s1045_s17 = scalar_lea.hbm %s1478_s7, 256 }
 0x478   : > { %p1042_p10 = scmp.ne.s32.totalorder %s1425_s19, %s1041_s10  ;;  %p1046_p4 = scmp.lt.u32.totalorder %s1425_s19, %s1478_s7 }
 0x479   : > { %p1047_p11 = scmp.lt.u32.totalorder %s1045_s17, %s1041_s10  ;;  %p1049_p8 = scmp.lt.u32.totalorder %s1041_s10, %s1425_s19 }
 0x47a   : > { %p1043_p3 = pnand %p1042_p10, %p1500_p5 }
 0x47b   : > { %p1048_p12 = por %p1047_p11, %p1046_p4 }
 0x47c   : > { %p1044_p1 = pneg %p1043_p3 }
 0x47d   : > { %p1050_p13 = por %p1049_p8, %p1048_p12 }
 0x47f   : > { %p1051_p0 = pnand %p1050_p13, %p1044_p1 }
 0x481   : > { %1054 = shalt.err (!%p1051_p0)
}
 0x482   : > { %804 = dma.vmem_to_hbm [thread:$0]  (%p1500_p5), %s1427_s12, 128, %s1425_s19, %s597_s30  }
 0x483 PF: > { %s622_s22 = sand.u32 1, %s1097_s24   ;;  %p1501_p7 = scmp.ne.s32.totalorder %s1489_s11, 0 }
 0x484   : > { %p1502_p9 = scmp.ge.s32.totalorder %s1109_s27, 2  ;;  %s623_s14 = scalar_lea.sflag [#allocation4], %s622_s22 }
 0x486   : > { %p824_p2 = pnand %p1502_p9, %p1501_p7 }
 0x488   : > { %1092 = dma.done.wait (!%p824_p2), %s623_s14, 128  }
 0x489   : > { %1094 = vsyncadd (!%p824_p2), %s623_s14, 4294967168  ;;  %p20_p6 = scmp.ge.s32.totalorder %s1305_s21, 4   ;;  %s1503_s24 = smov %s1101_s25 }
 0x48a   : > { %s1504_s25 = smov %s1105_s26  ;;  %s1505_s26 = smov %s1322_s9 }
 0x48b   : > { %s1506_s27 = smov %s1305_s21  ;;  %22 = sbr.rel (!%p20_p6) target bundleno = 6 (0x6), region = 108 }
 0x492   :  { %628 = vsyncpa [#allocation3], 1 }
 0x493   :  { %630 = vsyncpa [#allocation3 + $0x1], 1 }
 0x494   :  { %631 = vsyncpa [#allocation6], 1 }
 0x495   :  { %632 = vsyncpa [#allocation10], 1 }
 0x496   :  { %633 = vsyncpa [#allocation4], 1 }
 0x497   :  { %635 = vsyncpa [#allocation4 + $0x1], 1 }

</bundles_post_ra>
